<compile_context>
chip_gen: v5e
topology: v5e:2x2
jax: 0.10.0
libtpu: 0.0.40
codegen_flags: <defaults>
</compile_context>

<pallas_src>
import math

import jax
import jax.numpy as jnp
from jax import lax
from jax.experimental import pallas as pl
from jax.experimental.pallas import tpu as pltpu


def _make_dwconv_kernel(C, TH, WC):
    def kernel(x_ref, halo_ref, w_ref, b_ref, o_ref):
        # x_ref:    (TH, WC)    current row-tile, folded (w*C + c) lanes
        # halo_ref: (2, WC)     row above / row below this tile (zeros at border)
        # w_ref:    (3, 3, WC)  f32 weights pre-shifted to SOURCE lanes, border cols zeroed
        # b_ref:    (1, WC)     f32 bias tiled over W
        # o_ref:    (TH, WC)
        xf = x_ref[...].astype(jnp.float32)      # cast once; reused by every tap
        hf = halo_ref[...].astype(jnp.float32)   # (2, WC)
        w = w_ref[...]                           # (3, 3, WC), f32

        # dy taps as wrapped sublane rolls; wrapped edge rows patched below.
        up = pltpu.roll(xf, 1, axis=0)           # row r <- x[r-1]   (row 0 wrapped)
        dn = pltpu.roll(xf, TH - 1, axis=0)      # row r <- x[r+1]   (row TH-1 wrapped)

        # Per-dx weighted dy sums first (weights live on SOURCE lanes), so only
        # two full-slab lane rolls are needed instead of six.
        u_l = xf * w[1, 0] + up * w[0, 0] + dn * w[2, 0]
        u_m = xf * w[1, 1] + up * w[0, 1] + dn * w[2, 1]
        u_r = xf * w[1, 2] + up * w[0, 2] + dn * w[2, 2]

        acc = (u_m + b_ref[...]
               + pltpu.roll(u_l, C, axis=1)        # source col w -> output col w+1
               + pltpu.roll(u_r, WC - C, axis=1))  # source col w -> output col w-1
        o_ref[...] = acc.astype(o_ref.dtype)

        # Patch only the two edge rows: replace the wrapped dy tap with the halo
        # row (zeros at the image border).  Strips are (1, WC) -> negligible work.
        d_up = hf[0:1, :] - xf[TH - 1:TH, :]
        d_dn = hf[1:2, :] - xf[0:1, :]
        c_top = (d_up * w[0, 1]
                 + pltpu.roll(d_up * w[0, 0], C, axis=1)
                 + pltpu.roll(d_up * w[0, 2], WC - C, axis=1))
        c_bot = (d_dn * w[2, 1]
                 + pltpu.roll(d_dn * w[2, 0], C, axis=1)
                 + pltpu.roll(d_dn * w[2, 2], WC - C, axis=1))
        o_ref[0:1, :] = (acc[0:1, :] + c_top).astype(o_ref.dtype)
        o_ref[TH - 1:TH, :] = (acc[TH - 1:TH, :] + c_bot).astype(o_ref.dtype)

    return kernel


def _pick_tile_h(h_pad, batch, row_bytes, target_bytes=2 << 20):
    """Largest TH that is a multiple of 8, divides h_pad, keeps a block <= ~2 MiB
    (v7x-safe), and -- when possible -- leaves >= 2 grid steps for the 2 v7x TCs."""
    cands = [t for t in range(8, h_pad + 1, 8) if h_pad % t == 0]
    fitting = [t for t in cands if t * row_bytes <= target_bytes] or [min(cands)]
    th = max(fitting)
    if batch * (h_pad // th) < 2:
        split = [t for t in fitting if h_pad // t >= 2]
        if split:
            th = max(split)
        elif any(h_pad // t >= 2 for t in cands):
            th = max(t for t in cands if h_pad // t >= 2)
    return th


def dwconv_pallas(x, weight, bias, H, W, *, tile_h=None):
    """x: (B, N, C) with N == H*W; weight: (3, 3, C); bias: (C,) -> (B, N, C)."""
    B, N, C_in = x.shape
    assert N == H * W
    orig_dtype = x.dtype
    C = C_in

    # Ensure the folded lane width W*C is a multiple of 128 (unmasked stores):
    # pad channels with zeros if necessary (no-op for the common shapes).
    if (W * C) % 128 != 0:
        cmul = 128 // math.gcd(W, 128)
        C_padded = ((C + cmul - 1) // cmul) * cmul
        x = jnp.pad(x, ((0, 0), (0, 0), (0, C_padded - C)))
        weight = jnp.pad(weight, ((0, 0), (0, 0), (0, C_padded - C)))
        bias = jnp.pad(bias, ((0, C_padded - C),))
        C = C_padded
    WC = W * C

    x_img = x.reshape(B, H, WC)              # pure view: lane index = w*C + c

    # Pad H up to a multiple of 8 with zero rows: the zero row below row H-1 acts
    # exactly like the conv's zero padding; padded output rows are discarded.
    H_pad = ((H + 7) // 8) * 8
    if H_pad != H:
        x_img = jnp.pad(x_img, ((0, 0), (0, H_pad - H), (0, 0)))

    if tile_h is None:
        tile_h = _pick_tile_h(H_pad, B, WC * x_img.dtype.itemsize)
    TH = tile_h
    assert H_pad % TH == 0 and TH % 8 == 0
    n_tiles = H_pad // TH

    # Fold weights over W onto SOURCE lanes: w_src[dy, 0] multiplies the slab that
    # is then lane-rolled by +C (source col w -> output col w+1), so the mask
    # zeroes source column W-1; w_src[dy, 2] is rolled by -C, mask zeroes col 0.
    col = jnp.arange(W)
    src_mask = jnp.stack(
        [col < W - 1, jnp.ones((W,), dtype=jnp.bool_), col > 0], axis=0
    ).astype(jnp.float32)                                            # (3, W)
    w_src = (weight.astype(jnp.float32)[:, :, None, :]
             * src_mask[None, :, :, None]).reshape(3, 3, WC)
    b_folded = jnp.tile(bias.astype(jnp.float32), W).reshape(1, WC)

    # Halo rows: the row just above / just below each H-tile (zeros at the border).
    zero_row = jnp.zeros((B, 1, WC), x_img.dtype)
    if n_tiles > 1:
        tops = jnp.concatenate([zero_row, x_img[:, TH - 1:H_pad - 1:TH, :]], axis=1)
        bots = jnp.concatenate([x_img[:, TH:H_pad:TH, :], zero_row], axis=1)
    else:
        tops, bots = zero_row, zero_row
    halos = jnp.stack([tops, bots], axis=2)                          # (B, n_tiles, 2, WC)

    kernel = _make_dwconv_kernel(C=C, TH=TH, WC=WC)

    # Generation-aware VMEM budget from the real per-step footprint:
    # 2x(in + out + halo + weights + bias) buffers + ~6 full-slab f32 temporaries.
    itemsize = x_img.dtype.itemsize
    footprint = (2 * (TH * WC * itemsize            # input block
                      + TH * WC * itemsize          # output block
                      + 2 * WC * itemsize           # halo block
                      + 9 * WC * 4 + WC * 4)        # weights + bias
                 + 6 * TH * WC * 4)                 # f32 slab temporaries
    vmem_limit = int(min(max(int(footprint * 1.5), 4 << 20), 48 << 20))

    flops = int(2 * 9 * B * H_pad * WC)
    bytes_accessed = int((2 * B * H_pad * WC + halos.size) * itemsize
                         + (w_src.size + b_folded.size) * 4)

    out = pl.pallas_call(
        kernel,
        out_shape=jax.ShapeDtypeStruct((B, H_pad, WC), orig_dtype),
        grid=(B, n_tiles),
        in_specs=[
            # NOTE: if a v5e profile shows exposed DMA, add
            # pipeline_mode=pl.Buffered(3) to this input spec.
            pl.BlockSpec((pl.Squeezed(), TH, WC), lambda b, i: (b, i, 0)),
            pl.BlockSpec((pl.Squeezed(), pl.Squeezed(), 2, WC),
                         lambda b, i: (b, i, 0, 0)),
            pl.BlockSpec((3, 3, WC), lambda b, i: (0, 0, 0)),
            pl.BlockSpec((1, WC), lambda b, i: (0, 0)),
        ],
        out_specs=pl.BlockSpec((pl.Squeezed(), TH, WC), lambda b, i: (b, i, 0)),
        compiler_params=pltpu.CompilerParams(
            dimension_semantics=("parallel", "parallel"),
            vmem_limit_bytes=vmem_limit,
        ),
        cost_estimate=pl.CostEstimate(
            flops=flops, transcendentals=0, bytes_accessed=bytes_accessed),
    )(x_img, halos, w_src, b_folded)

    if H_pad != H:
        out = out[:, :H, :]
    if C != C_in:
        out = out.reshape(B, H, W, C)[..., :C_in]
    return out.reshape(B, N, C_in)


def _reference_dwconv(x, weight, bias, H, W):
    """Plain-JAX reference (matches PyTorch Conv2d(dim, dim, 3, 1, 1, groups=dim))."""
    B, N, C = x.shape
    x_img = x.reshape(B, H, W, C)
    rhs = weight[:, :, None, :]                                   # (3, 3, 1, C) HWIO
    y = lax.conv_general_dilated(
        x_img, rhs, window_strides=(1, 1), padding=((1, 1), (1, 1)),
        dimension_numbers=("NHWC", "HWIO", "NHWC"),
        feature_group_count=C)
    y = y + bias[None, None, None, :]
    return y.reshape(B, N, C)


if __name__ == "__main__":
    # Small shapes consistent with the module: dim (=C) = 32, H = W = 16.
    B, C, Himg, Wimg = 2, 32, 16, 16
    N = Himg * Wimg

    key = jax.random.PRNGKey(0)
    kx, kw, kb = jax.random.split(key, 3)

    x = jax.random.normal(kx, (B, N, C), dtype=jnp.float32)
    # Conv2d(dim, dim, 3, groups=dim) parameters stored channels-last as (3, 3, C).
    weight = jax.random.normal(kw, (3, 3, C), dtype=jnp.float32) * 0.1
    bias = jax.random.normal(kb, (C,), dtype=jnp.float32) * 0.1

    ref = _reference_dwconv(x, weight, bias, Himg, Wimg)

    # Default tiling (single row-tile per batch element for this tiny shape).
    out = dwconv_pallas(x, weight, bias, Himg, Wimg)
    out = jax.block_until_ready(out)
    assert out.shape == (B, N, C)
    assert jnp.allclose(out, ref, atol=1e-5, rtol=1e-5)

    # Also exercise the multi-H-tile halo path explicitly.
    out2 = dwconv_pallas(x, weight, bias, Himg, Wimg, tile_h=8)
    out2 = jax.block_until_ready(out2)
    assert jnp.allclose(out2, ref, atol=1e-5, rtol=1e-5)

    print("KERNEL_OK")
</pallas_src>

<mosaic_0001>
module attributes {stable_mosaic.version = 11 : i64} {
  func.func @kernel(%arg0: i32, %arg1: i32, %arg2: memref<1x16x512xf32, #tpu.memory_space<vmem>>, %arg3: memref<1x1x2x512xf32, #tpu.memory_space<vmem>>, %arg4: memref<3x3x512xf32, #tpu.memory_space<vmem>>, %arg5: memref<1x512xf32, #tpu.memory_space<vmem>>, %arg6: memref<1x16x512xf32, #tpu.memory_space<vmem>>) attributes {dimension_semantics = [#tpu.dimension_semantics<parallel>, #tpu.dimension_semantics<parallel>], iteration_bounds = array<i64: 2, 1>, scalar_prefetch = 0 : i64, scratch_operands = 0 : i64, tpu.core_type = #tpu.core_type<tc>, window_params = [{transform_indices = @transform_0, window_bounds = array<i64: 1, 16, 512>}, {transform_indices = @transform_1, window_bounds = array<i64: 1, 1, 2, 512>}, {pipeline_mode = #tpu.pipeline_mode<synchronous>, transform_indices = @transform_2, window_bounds = array<i64: 3, 3, 512>}, {pipeline_mode = #tpu.pipeline_mode<synchronous>, transform_indices = @transform_3, window_bounds = array<i64: 1, 512>}, {transform_indices = @transform_4, window_bounds = array<i64: 1, 16, 512>}]} {
    %c0 = arith.constant 0 : index
    %c0_0 = arith.constant 0 : index
    %c0_1 = arith.constant 0 : index
    %0 = vector.load %arg2[%c0, %c0_0, %c0_1] : memref<1x16x512xf32, #tpu.memory_space<vmem>>, vector<1x16x512xf32>
    %1 = vector.shape_cast %0 : vector<1x16x512xf32> to vector<16x512xf32>
    %c0_2 = arith.constant 0 : index
    %c0_3 = arith.constant 0 : index
    %c0_4 = arith.constant 0 : index
    %c0_5 = arith.constant 0 : index
    %2 = vector.load %arg3[%c0_2, %c0_3, %c0_4, %c0_5] : memref<1x1x2x512xf32, #tpu.memory_space<vmem>>, vector<1x1x2x512xf32>
    %3 = vector.shape_cast %2 : vector<1x1x2x512xf32> to vector<2x512xf32>
    %c0_6 = arith.constant 0 : index
    %c0_7 = arith.constant 0 : index
    %c0_8 = arith.constant 0 : index
    %4 = vector.load %arg4[%c0_6, %c0_7, %c0_8] : memref<3x3x512xf32, #tpu.memory_space<vmem>>, vector<3x3x512xf32>
    %c1_i32 = arith.constant 1 : i32
    %5 = tpu.dynamic_rotate %1 by %c1_i32 dim 0 : vector<16x512xf32>, i32 -> vector<16x512xf32>
    %c15_i32 = arith.constant 15 : i32
    %6 = tpu.dynamic_rotate %1 by %c15_i32 dim 0 : vector<16x512xf32>, i32 -> vector<16x512xf32>
    %7 = vector.extract_strided_slice %4 {offsets = [1, 0, 0], sizes = [1, 1, 512], strides = [1, 1, 1]} : vector<3x3x512xf32> to vector<1x1x512xf32>
    %8 = vector.shape_cast %7 : vector<1x1x512xf32> to vector<512xf32>
    %9 = vector.shape_cast %8 : vector<512xf32> to vector<1x512xf32>
    %10 = vector.broadcast %9 : vector<1x512xf32> to vector<16x512xf32>
    %11 = arith.mulf %1, %10 : vector<16x512xf32>
    %12 = vector.extract_strided_slice %4 {offsets = [0, 0, 0], sizes = [1, 1, 512], strides = [1, 1, 1]} : vector<3x3x512xf32> to vector<1x1x512xf32>
    %13 = vector.shape_cast %12 : vector<1x1x512xf32> to vector<512xf32>
    %14 = vector.shape_cast %13 : vector<512xf32> to vector<1x512xf32>
    %15 = vector.broadcast %14 : vector<1x512xf32> to vector<16x512xf32>
    %16 = arith.mulf %5, %15 : vector<16x512xf32>
    %17 = arith.addf %11, %16 : vector<16x512xf32>
    %18 = vector.extract_strided_slice %4 {offsets = [2, 0, 0], sizes = [1, 1, 512], strides = [1, 1, 1]} : vector<3x3x512xf32> to vector<1x1x512xf32>
    %19 = vector.shape_cast %18 : vector<1x1x512xf32> to vector<512xf32>
    %20 = vector.shape_cast %19 : vector<512xf32> to vector<1x512xf32>
    %21 = vector.broadcast %20 : vector<1x512xf32> to vector<16x512xf32>
    %22 = arith.mulf %6, %21 : vector<16x512xf32>
    %23 = arith.addf %17, %22 : vector<16x512xf32>
    %24 = vector.extract_strided_slice %4 {offsets = [1, 1, 0], sizes = [1, 1, 512], strides = [1, 1, 1]} : vector<3x3x512xf32> to vector<1x1x512xf32>
    %25 = vector.shape_cast %24 : vector<1x1x512xf32> to vector<512xf32>
    %26 = vector.shape_cast %25 : vector<512xf32> to vector<1x512xf32>
    %27 = vector.broadcast %26 : vector<1x512xf32> to vector<16x512xf32>
    %28 = arith.mulf %1, %27 : vector<16x512xf32>
    %29 = vector.extract_strided_slice %4 {offsets = [0, 1, 0], sizes = [1, 1, 512], strides = [1, 1, 1]} : vector<3x3x512xf32> to vector<1x1x512xf32>
    %30 = vector.shape_cast %29 : vector<1x1x512xf32> to vector<512xf32>
    %31 = vector.shape_cast %30 : vector<512xf32> to vector<1x512xf32>
    %32 = vector.broadcast %31 : vector<1x512xf32> to vector<16x512xf32>
    %33 = arith.mulf %5, %32 : vector<16x512xf32>
    %34 = arith.addf %28, %33 : vector<16x512xf32>
    %35 = vector.extract_strided_slice %4 {offsets = [2, 1, 0], sizes = [1, 1, 512], strides = [1, 1, 1]} : vector<3x3x512xf32> to vector<1x1x512xf32>
    %36 = vector.shape_cast %35 : vector<1x1x512xf32> to vector<512xf32>
    %37 = vector.shape_cast %36 : vector<512xf32> to vector<1x512xf32>
    %38 = vector.broadcast %37 : vector<1x512xf32> to vector<16x512xf32>
    %39 = arith.mulf %6, %38 : vector<16x512xf32>
    %40 = arith.addf %34, %39 : vector<16x512xf32>
    %41 = vector.extract_strided_slice %4 {offsets = [1, 2, 0], sizes = [1, 1, 512], strides = [1, 1, 1]} : vector<3x3x512xf32> to vector<1x1x512xf32>
    %42 = vector.shape_cast %41 : vector<1x1x512xf32> to vector<512xf32>
    %43 = vector.shape_cast %42 : vector<512xf32> to vector<1x512xf32>
    %44 = vector.broadcast %43 : vector<1x512xf32> to vector<16x512xf32>
    %45 = arith.mulf %1, %44 : vector<16x512xf32>
    %46 = vector.extract_strided_slice %4 {offsets = [0, 2, 0], sizes = [1, 1, 512], strides = [1, 1, 1]} : vector<3x3x512xf32> to vector<1x1x512xf32>
    %47 = vector.shape_cast %46 : vector<1x1x512xf32> to vector<512xf32>
    %48 = vector.shape_cast %47 : vector<512xf32> to vector<1x512xf32>
    %49 = vector.broadcast %48 : vector<1x512xf32> to vector<16x512xf32>
    %50 = arith.mulf %5, %49 : vector<16x512xf32>
    %51 = arith.addf %45, %50 : vector<16x512xf32>
    %52 = vector.extract_strided_slice %4 {offsets = [2, 2, 0], sizes = [1, 1, 512], strides = [1, 1, 1]} : vector<3x3x512xf32> to vector<1x1x512xf32>
    %53 = vector.shape_cast %52 : vector<1x1x512xf32> to vector<512xf32>
    %54 = vector.shape_cast %53 : vector<512xf32> to vector<1x512xf32>
    %55 = vector.broadcast %54 : vector<1x512xf32> to vector<16x512xf32>
    %56 = arith.mulf %6, %55 : vector<16x512xf32>
    %57 = arith.addf %51, %56 : vector<16x512xf32>
    %c0_9 = arith.constant 0 : index
    %c0_10 = arith.constant 0 : index
    %58 = vector.load %arg5[%c0_9, %c0_10] : memref<1x512xf32, #tpu.memory_space<vmem>>, vector<1x512xf32>
    %59 = vector.broadcast %58 : vector<1x512xf32> to vector<16x512xf32>
    %60 = arith.addf %40, %59 : vector<16x512xf32>
    %c32_i32 = arith.constant 32 : i32
    %61 = tpu.dynamic_rotate %23 by %c32_i32 dim 1 : vector<16x512xf32>, i32 -> vector<16x512xf32>
    %62 = arith.addf %60, %61 : vector<16x512xf32>
    %c480_i32 = arith.constant 480 : i32
    %63 = tpu.dynamic_rotate %57 by %c480_i32 dim 1 : vector<16x512xf32>, i32 -> vector<16x512xf32>
    %64 = arith.addf %62, %63 : vector<16x512xf32>
    %c0_11 = arith.constant 0 : index
    %c0_12 = arith.constant 0 : index
    %c0_13 = arith.constant 0 : index
    %65 = vector.load %arg6[%c0_11, %c0_12, %c0_13] : memref<1x16x512xf32, #tpu.memory_space<vmem>>, vector<1x16x512xf32>
    %66 = vector.shape_cast %65 : vector<1x16x512xf32> to vector<16x512xf32>
    %67 = vector.shape_cast %64 : vector<16x512xf32> to vector<1x16x512xf32>
    tpu.vector_store %arg6[%c0_11, %c0_12, %c0_13], %67 {strides = array<i32>} : memref<1x16x512xf32, #tpu.memory_space<vmem>>, vector<1x16x512xf32>,
    %68 = vector.extract_strided_slice %3 {offsets = [0, 0], sizes = [1, 512], strides = [1, 1]} : vector<2x512xf32> to vector<1x512xf32>
    %69 = vector.extract_strided_slice %1 {offsets = [15, 0], sizes = [1, 512], strides = [1, 1]} : vector<16x512xf32> to vector<1x512xf32>
    %70 = arith.subf %68, %69 : vector<1x512xf32>
    %71 = vector.extract_strided_slice %3 {offsets = [1, 0], sizes = [1, 512], strides = [1, 1]} : vector<2x512xf32> to vector<1x512xf32>
    %72 = vector.extract_strided_slice %1 {offsets = [0, 0], sizes = [1, 512], strides = [1, 1]} : vector<16x512xf32> to vector<1x512xf32>
    %73 = arith.subf %71, %72 : vector<1x512xf32>
    %74 = vector.extract_strided_slice %4 {offsets = [0, 1, 0], sizes = [1, 1, 512], strides = [1, 1, 1]} : vector<3x3x512xf32> to vector<1x1x512xf32>
    %75 = vector.shape_cast %74 : vector<1x1x512xf32> to vector<512xf32>
    %76 = vector.shape_cast %75 : vector<512xf32> to vector<1x512xf32>
    %77 = arith.mulf %70, %76 : vector<1x512xf32>
    %78 = vector.extract_strided_slice %4 {offsets = [0, 0, 0], sizes = [1, 1, 512], strides = [1, 1, 1]} : vector<3x3x512xf32> to vector<1x1x512xf32>
    %79 = vector.shape_cast %78 : vector<1x1x512xf32> to vector<512xf32>
    %80 = vector.shape_cast %79 : vector<512xf32> to vector<1x512xf32>
    %81 = arith.mulf %70, %80 : vector<1x512xf32>
    %c32_i32_14 = arith.constant 32 : i32
    %82 = tpu.dynamic_rotate %81 by %c32_i32_14 dim 1 : vector<1x512xf32>, i32 -> vector<1x512xf32>
    %83 = arith.addf %77, %82 : vector<1x512xf32>
    %84 = vector.extract_strided_slice %4 {offsets = [0, 2, 0], sizes = [1, 1, 512], strides = [1, 1, 1]} : vector<3x3x512xf32> to vector<1x1x512xf32>
    %85 = vector.shape_cast %84 : vector<1x1x512xf32> to vector<512xf32>
    %86 = vector.shape_cast %85 : vector<512xf32> to vector<1x512xf32>
    %87 = arith.mulf %70, %86 : vector<1x512xf32>
    %c480_i32_15 = arith.constant 480 : i32
    %88 = tpu.dynamic_rotate %87 by %c480_i32_15 dim 1 : vector<1x512xf32>, i32 -> vector<1x512xf32>
    %89 = arith.addf %83, %88 : vector<1x512xf32>
    %90 = vector.extract_strided_slice %4 {offsets = [2, 1, 0], sizes = [1, 1, 512], strides = [1, 1, 1]} : vector<3x3x512xf32> to vector<1x1x512xf32>
    %91 = vector.shape_cast %90 : vector<1x1x512xf32> to vector<512xf32>
    %92 = vector.shape_cast %91 : vector<512xf32> to vector<1x512xf32>
    %93 = arith.mulf %73, %92 : vector<1x512xf32>
    %94 = vector.extract_strided_slice %4 {offsets = [2, 0, 0], sizes = [1, 1, 512], strides = [1, 1, 1]} : vector<3x3x512xf32> to vector<1x1x512xf32>
    %95 = vector.shape_cast %94 : vector<1x1x512xf32> to vector<512xf32>
    %96 = vector.shape_cast %95 : vector<512xf32> to vector<1x512xf32>
    %97 = arith.mulf %73, %96 : vector<1x512xf32>
    %c32_i32_16 = arith.constant 32 : i32
    %98 = tpu.dynamic_rotate %97 by %c32_i32_16 dim 1 : vector<1x512xf32>, i32 -> vector<1x512xf32>
    %99 = arith.addf %93, %98 : vector<1x512xf32>
    %100 = vector.extract_strided_slice %4 {offsets = [2, 2, 0], sizes = [1, 1, 512], strides = [1, 1, 1]} : vector<3x3x512xf32> to vector<1x1x512xf32>
    %101 = vector.shape_cast %100 : vector<1x1x512xf32> to vector<512xf32>
    %102 = vector.shape_cast %101 : vector<512xf32> to vector<1x512xf32>
    %103 = arith.mulf %73, %102 : vector<1x512xf32>
    %c480_i32_17 = arith.constant 480 : i32
    %104 = tpu.dynamic_rotate %103 by %c480_i32_17 dim 1 : vector<1x512xf32>, i32 -> vector<1x512xf32>
    %105 = arith.addf %99, %104 : vector<1x512xf32>
    %106 = vector.extract_strided_slice %64 {offsets = [0, 0], sizes = [1, 512], strides = [1, 1]} : vector<16x512xf32> to vector<1x512xf32>
    %107 = arith.addf %106, %89 : vector<1x512xf32>
    %c0_18 = arith.constant 0 : index
    %c0_19 = arith.constant 0 : index
    %c0_20 = arith.constant 0 : index
    %108 = vector.load %arg6[%c0_18, %c0_19, %c0_20] : memref<1x16x512xf32, #tpu.memory_space<vmem>>, vector<1x1x512xf32>
    %109 = vector.shape_cast %108 : vector<1x1x512xf32> to vector<1x512xf32>
    %110 = vector.shape_cast %107 : vector<1x512xf32> to vector<1x1x512xf32>
    tpu.vector_store %arg6[%c0_18, %c0_19, %c0_20], %110 {strides = array<i32>} : memref<1x16x512xf32, #tpu.memory_space<vmem>>, vector<1x1x512xf32>,
    %111 = vector.extract_strided_slice %64 {offsets = [15, 0], sizes = [1, 512], strides = [1, 1]} : vector<16x512xf32> to vector<1x512xf32>
    %112 = arith.addf %111, %105 : vector<1x512xf32>
    %c0_21 = arith.constant 0 : index
    %c15 = arith.constant 15 : index
    %c0_22 = arith.constant 0 : index
    %113 = vector.load %arg6[%c0_21, %c15, %c0_22] : memref<1x16x512xf32, #tpu.memory_space<vmem>>, vector<1x1x512xf32>
    %114 = vector.shape_cast %113 : vector<1x1x512xf32> to vector<1x512xf32>
    %115 = vector.shape_cast %112 : vector<1x512xf32> to vector<1x1x512xf32>
    tpu.vector_store %arg6[%c0_21, %c15, %c0_22], %115 {strides = array<i32>} : memref<1x16x512xf32, #tpu.memory_space<vmem>>, vector<1x1x512xf32>,
    return
  }
  func.func @transform_0(%arg0: i32, %arg1: i32) -> (i32, i32, i32) {
    %c0_i32 = arith.constant 0 : i32
    %c0_i32_0 = arith.constant 0 : i32
    return %arg0, %arg1, %c0_i32 : i32, i32, i32
  }
  func.func @transform_1(%arg0: i32, %arg1: i32) -> (i32, i32, i32, i32) {
    %c0_i32 = arith.constant 0 : i32
    %c0_i32_0 = arith.constant 0 : i32
    %c0_i32_1 = arith.constant 0 : i32
    return %arg0, %arg1, %c0_i32, %c0_i32_0 : i32, i32, i32, i32
  }
  func.func @transform_2(%arg0: i32, %arg1: i32) -> (i32, i32, i32) {
    %c0_i32 = arith.constant 0 : i32
    %c0_i32_0 = arith.constant 0 : i32
    %c0_i32_1 = arith.constant 0 : i32
    %c0_i32_2 = arith.constant 0 : i32
    return %c0_i32, %c0_i32_0, %c0_i32_1 : i32, i32, i32
  }
  func.func @transform_3(%arg0: i32, %arg1: i32) -> (i32, i32) {
    %c0_i32 = arith.constant 0 : i32
    %c0_i32_0 = arith.constant 0 : i32
    %c0_i32_1 = arith.constant 0 : i32
    return %c0_i32, %c0_i32_0 : i32, i32
  }
  func.func @transform_4(%arg0: i32, %arg1: i32) -> (i32, i32, i32) {
    %c0_i32 = arith.constant 0 : i32
    %c0_i32_0 = arith.constant 0 : i32
    return %arg0, %arg1, %c0_i32 : i32, i32, i32
  }
}

</mosaic_0001>

<bundles_post_ra>
// kernel: tpu_custom_call.1
= control target key start
LH: loop header
LB: loop body
LE: loop exit
PB: predicated region body
PF: predicated region fallthrough
CT: control target
= control target key end

     0   :  { %s2242_s0 = inlined_call_operand.hbm [shape: f32[2,16,512], index: 0, kind: input, shape index: {}]   ;;  %s2243_s1 = inlined_call_operand.hbm [shape: f32[2,1,2,512], index: 1, kind: input, shape index: {}]   ;;  %s2244_s2 = inlined_call_operand.hbm [shape: f32[3,3,512], index: 2, kind: input, shape index: {}]   ;;  %s2245_s3 = inlined_call_operand.hbm [shape: f32[1,512], index: 3, kind: input, shape index: {}]   ;;  %s2246_s4 = inlined_call_operand.hbm [shape: f32[2,16,512], index: 4, kind: output, shape index: {}]  }
   0x1   :  { %2250 = sst [smem:[#allocation17_spill]] %s2242_s0 }
   0x2   :  { %2251 = sst [smem:[#allocation18_spill]] %s2244_s2 }
   0x3   :  { %2252 = sst [smem:[#allocation19_spill]] %s2245_s3 }
   0x4   :  { %9 = vsyncpa [#allocation3], 0 }
   0x5   :  { %11 = vsyncpa [#allocation3 + $0x1], 0 }
   0x6   :  { %12 = vsyncpa [#allocation6], 0 }
   0x7   :  { %14 = vsyncpa [#allocation6 + $0x1], 0 }
   0x8   :  { %15 = vsyncpa [#allocation9], 0 }
   0x9   :  { %16 = vsyncpa [#allocation4], 0 }
   0xa   :  { %18 = vsyncpa [#allocation4 + $0x1], 0  ;;  %s1477_s15 = smov 0   ;;  %s1479_s16 = smov 0  }
   0xb   :  { %s1481_s17 = smov 0   ;;  %s1483_s18 = smov 0  }
   0xc   :  { %s1485_s19 = smov 0   ;;  %s1487_s20 = smov 0  }
   0xd LB: > { %s1508_s21 = sadd.s32 4294967295, %s1441_s20   ;;  %s1104_s22 = sadd.s32 4294967294, %s1441_s20   ;;  %s1441_s20 = sphi %s1487_s20, %s24_s20   ;;  %s1437_s19 = sphi %s1485_s19, %s2272_s19   ;;  %s1433_s18 = sphi %s1483_s18, %s2271_s18   ;;  %s1429_s17 = sphi %s1481_s17, %s2270_s17   ;;  %s1425_s16 = sphi %s1479_s16, %s2269_s16   ;;  %s1421_s15 = sphi %s1477_s15, %s2268_s15  }
   0xe   : > { %p58_p0 = scmp.ne.s32.totalorder %s1425_s16, %s1421_s15  ;;  %p59_p1 = scmp.eq.s32.totalorder %s1508_s21, 0 }
   0xf   : > { %p154_p2 = scmp.eq.s32.totalorder %s1508_s21, 1  ;;  %p160_p3 = scmp.eq.s32.totalorder %s1104_s22, 1 }
  0x10   : > { %p1517_p4 = por %p59_p1, %p58_p0  ;;  %p1105_p5 = scmp.ge.s32.totalorder %s1441_s20, 1 }
  0x11   : > { %p1522_p6 = por %p160_p3, %p58_p0  ;;  %p167_p7 = scmp.lt.s32.totalorder %s1441_s20, 3 }
  0x12   : > { %s2255_s2 = sld [smem:[#allocation18_spill]]  ;;  %s1443_s29 = smov [#allocation7]  }
  0x13   : > { %p1530_p8 = pnand %p1105_p5, %p167_p7  ;;  %s180_s30 = sshll.u32 %s1443_s29, 4  ;;  %s181_s30 = int_to_ptr.vmem [resolvable:$true] %s180_s30 }
  0x14   : > { %p1108_p11 = scmp.ge.s32.totalorder %s1441_s20, 2  ;;  %s2257_s3 = sld [smem:[#allocation19_spill]] }
  0x15   : > { %p1146_p9 = pneg %p1530_p8  ;;  %s1444_s8 = smov 256  }
  0x16   : > { %s1445_s9 = smov 16   ;;  %s1446_s10 = smov [#allocation8]  }
  0x17   : > { %p1147_p10 = pnand %p1146_p9, %p59_p1  ;;  %s195_s11 = sshll.u32 %s1446_s10, 4  ;;  %s196_s11 = int_to_ptr.vmem [resolvable:$true] %s195_s11 }
  0x18   : > { %s178_s27 = sshll.u32 %s2255_s2, 4  ;;  %s36_s12 = sadd.s32 1, %s1437_s19  ;;  %s179_s27 = int_to_ptr.hbm [resolvable:$true] %s178_s27 }
  0x19   : > { %1149 = dma.hbm_to_vmem [thread:$0]  (!%p1147_p10), %s179_s27, 768, %s181_s30, [#allocation6], %s1444_s8, %s1444_s8, %s1445_s9  }
  0x1a   : > { %s193_s7 = sshll.u32 %s2257_s3, 4  ;;  %s45_s13 = sadd.s32 1, %s1429_s17  ;;  %s194_s7 = int_to_ptr.hbm [resolvable:$true] %s193_s7 }
  0x1b   : > { %1152 = dma.hbm_to_vmem [thread:$0]  (!%p1147_p10), %s194_s7, 64, %s196_s11, [#allocation9]  }
  0x1c   : > { %p38_p12 = scmp.ge.s32.totalorder %s36_s12, 2  ;;  %p52_p13 = scmp.ne.s32.totalorder %s1429_s17, %s1425_s16 }
  0x1d   : > { %p53_p0 = scmp.eq.s32.totalorder %s1441_s20, 0  ;;  %p1166_p3 = scmp.lt.s32.totalorder %s1441_s20, 2 }
  0x1e   : > { %s2274_s12 = smov (%p38_p12, %s36_s12), 0  ;;  %p1556_p7 = por %p154_p2, %p52_p13 }
  0x1f   : > { %2258 = sst [smem:[#allocation16_spill]] %s2274_s12  ;;  %p1550_p5 = por %p53_p0, %p52_p13 }
  0x20   : > { %s40_s25 = ssub.s32 %s1437_s19, %s2274_s12  ;;  %s206_s26 = sand.u32 1, %s1429_s17  }
  0x21   : > { %p43_p9 = scmp.eq.s32.totalorder %s40_s25, 0  ;;  %s1109_s27 = sshll.u32 %s206_s26, 6 }
  0x22   : > { %s1129_s29 = sshll.u32 %s1437_s19, 6  ;;  %s2261_s0 = sld [smem:[#allocation17_spill]] }
  0x23   : > { %s1565_s30 = scalar_select %p43_p9, %s1429_s17, %s45_s13  }
  0x24   : > { %s210_s9 = scalar_lea.vmem [#allocation2], %s1109_s27  ;;  %p1574_p2 = pnand %p1166_p3, %p1550_p5 }
  0x25   : > { %s221_s10 = sshll.u32 %s210_s9, 4  ;;  %s231_s25 = sand.u32 1, %s1441_s20   ;;  %s222_s10 = int_to_ptr.vmem [resolvable:$true] %s221_s10 }
  0x26   : > { %s207_s13 = scalar_lea.sflag [#allocation3], %s206_s26  ;;  %s1447_s2 = smov 512  }
  0x27   : > { %s1448_s3 = smov 32   ;;  %s1130_s5 = sshll.u32 %s1437_s19, 3 }
  0x28   : > { %s218_s7 = scalar_lea.hbm %s2261_s0, %s1129_s29  ;;  %s1112_s29 = sshll.u32 %s206_s26, 3 }
  0x29   : > { %s219_s8 = sshll.u32 %s218_s7, 4  ;;  %s242_s7 = scalar_lea.hbm %s2243_s1, %s1130_s5  ;;  %s220_s8 = int_to_ptr.hbm [resolvable:$true] %s219_s8 }
  0x2a   : > { %1156 = dma.hbm_to_vmem [thread:$0]  (!%p1574_p2), %s220_s8, 1024, %s222_s10, %s207_s13, %s1447_s2, %s1447_s2, %s1448_s3  }
  0x2b   : > { %s244_s14 = sshll.u32 %s242_s7, 4  ;;  %s235_s9 = scalar_lea.vmem [#allocation5], %s1112_s29  ;;  %s245_s14 = int_to_ptr.hbm [resolvable:$true] %s244_s14 }
  0x2c   : > { %s246_s0 = sshll.u32 %s235_s9, 4  ;;  %s232_s12 = scalar_lea.sflag [#allocation6], %s231_s25  ;;  %s247_s0 = int_to_ptr.vmem [resolvable:$true] %s246_s0 }
  0x2d   : > { %1159 = dma.hbm_to_vmem [thread:$0]  (!%p1574_p2), %s245_s14, 128, %s247_s0, %s232_s12  }
  0x2e   : > { %255 = sbr.rel (%p1530_p8) target bundleno = 291 (0x123), region = 36  ;;  %s1590_s2 = sand.u32 (!%p1530_p8), 1, %s1425_s16  }
  0x2f   : > { %s1116_s3 = sshll.u32 (!%p1530_p8), %s1590_s2, 6  ;;  %s258_s26 = scalar_lea.sflag (!%p1530_p8), [#allocation3], %s1590_s2 }
  0x30   : > { %s1596_s8 = scalar_lea.vmem (!%p1530_p8), [#allocation2], %s1116_s3 }
  0x33   : > { %1400 = dma.done.wait (%p1517_p4), %s258_s26, 1024  }
  0x34   : > { %1402 = vsyncadd (%p1517_p4), %s258_s26, 4294966272  ;;  %s267_s0 = sand.u32 1, %s1508_s21   ;;  %s1117_s28 = sshll.u32 %s1590_s2, 3 }
  0x35   : > { %s268_s12 = scalar_lea.sflag [#allocation6], %s267_s0  ;;  %s1604_s10 = scalar_lea.vmem [#allocation5], %s1117_s28 }
  0x36   : > { %1404 = dma.done.wait (%p1517_p4), %s268_s12, 128  }
  0x37   : > { %1406 = vsyncadd (%p1517_p4), %s268_s12, 4294967168 }
  0x38   : > { %1408 = dma.done.wait (%p59_p1), [#allocation6], 768  }
  0x39   : > { %1410 = vsyncadd (%p59_p1), [#allocation6], 4294966528 }
  0x3a   : > { %1412 = dma.done.wait (%p59_p1), [#allocation9], 64  }
  0x3b   : > { %1414 = vsyncadd (%p59_p1), [#allocation9], 4294967232  ;;  %v2248_v0 = vlaneseq  ;;  %v1622_v2 = vld [vmem:[%s1596_s8 + $0x10] sm:$0xff]  ;;  %v1627_v4 = vld [vmem:[#allocation7 + $0x8] sm:$0x77]  ;;  %s1449_s21 = smov 32  }
  0x3c   : > { %v1625_v3 = vld [vmem:[%s1596_s8 + $0x30] sm:$0xff]  ;;  %v1631_v5 = vld [vmem:[#allocation7 + $0x18] sm:$0x77]  ;;  %v1633_v6 = vld [vmem:[#allocation7 + $0x28] sm:$0x77]  ;;  %v331_v7 = vrot.slane %v1622_v2, 7 }
  0x3d   : > { %v1619_v1 = vshrl.u32 %v2248_v0, 7  ;;  %v335_v8 = vrot.slane %v1625_v3, 7  ;;  %v350_v9 = vrot.slane %v1622_v2, 1  ;;  %v354_v10 = vrot.slane %v1625_v3, 1  ;;  %v1642_v13 = vld [vmem:[%s1596_s8 + $0x8] sm:$0xff]  ;;  %v1690_v32 = vld [vmem:[%s1596_s8] sm:$0xff] }
  0x3e   : > { %v369_v11 = vperm.slane %v1631_v5, 0  ;;  %v391_v12 = vperm.slane %v1627_v4, 0  ;;  %v421_v15 = vperm.slane %v1633_v6, 0  ;;  %699 = vst.sshfl [vmem:[#allocation1 + $0x10] sm:$0xff pattern:$0x73625140] %v1625_v3 }
  0x3f   : > { %vm339_vm0 = vcmp.lt.s32.totalorder %v1619_v1, 1  ;;  %vm356_vm1 = vcmp.lt.s32.totalorder %v1619_v1, 7  ;;  %v1655_v16 = vld [vmem:[%s1596_s8 + $0x28] sm:$0xff]  ;;  %v1672_v22 = vld [vmem:[#allocation7] sm:$0x77]  ;;  %v330_v24 = vrot.slane %v1642_v13, 7 }
  0x40   : > { %v1650_v14 = vsel %vm339_vm0, %v335_v8, %v331_v7  ;;  %v1663_v17 = vsel %vm356_vm1, %v350_v9, %v354_v10  ;;  %v1665_v18 = vperm.slane %v369_v11, 0  ;;  %v1667_v19 = vperm.slane %v391_v12, 0  ;;  %v1674_v23 = vld [vmem:[#allocation7 + $0x10] sm:$0x77]  ;;  %v1681_v27 = vld [vmem:[#allocation7 + $0x20] sm:$0x77] }
  0x41   : > { %v1670_v21 = vperm.slane %v421_v15, 0  ;;  %v334_v28 = vrot.slane %v1655_v16, 7  ;;  %v349_v29 = vrot.slane %v1642_v13, 1  ;;  %v353_v31 = vrot.slane %v1655_v16, 1  ;;  %v1693_v33 = vld [vmem:[%s1596_s8 + $0x20] sm:$0xff]  ;;  %v1707_v38 = vld [vmem:[%s1596_s8 + $0x38] sm:$0xff] }
  0x42   : > { %v381_v25 = vmul.f32 %v1665_v18, %v1622_v2  ;;  %v403_v26 = vmul.f32 %v1667_v19, %v1650_v14  ;;  %698 = vst.sshfl [vmem:[#allocation1 + $0x8] sm:$0xff pattern:$0x73625140] %v1655_v16  ;;  %v368_v36 = vperm.slane %v1674_v23, 4  ;;  %v390_v37 = vperm.slane %v1672_v22, 4  ;;  %s1450_s23 = smov 96  }
  0x43   : > { %v433_v30 = vmul.f32 %v1670_v21, %v1663_v17  ;;  %v1701_v35 = vsel %vm339_vm0, %v334_v28, %v330_v24  ;;  %697 = vst.sshfl [vmem:[#allocation1] sm:$0xff pattern:$0x73625140] %v1693_v33  ;;  %v1715_v39 = vsel %vm356_vm1, %v349_v29, %v353_v31  ;;  %v420_v40 = vperm.slane %v1681_v27, 4  ;;  %s2069_s11 = scalar_lea.vmem [#allocation10], %s1116_s3  ;;  %s1131_s25 = sshll.u32 %s1433_s18, 6 }
  0x44   : > { %v411_v34 = vadd.f32 %v403_v26, %v381_v25  ;;  %v468_v41 = vperm.slane %v1672_v22, 5  ;;  %v496_v42 = vperm.slane %v1681_v27, 5  ;;  %700 = vst.sshfl [vmem:[#allocation1 + $0x18] sm:$0xff pattern:$0x73625140] %v1707_v38  ;;  %v376_v44 = vperm.slane %v368_v36, 0  ;;  %s967_s18 = scalar_lea.hbm %s2246_s4, %s1131_s25 }
  0x45   : > { %v398_v45 = vperm.slane %v390_v37, 0  ;;  %v711_v46 = vrot.slane %v1642_v13, 6  ;;  %v428_v47 = vperm.slane %v420_v40, 0  ;;  %v329_v50 = vrot.slane %v1690_v32, 7  ;;  %s968_s5 = sshll.u32 %s2069_s11, 4  ;;  %s970_s27 = sshll.u32 %s967_s18, 4  ;;  %s969_s5 = int_to_ptr.vmem [resolvable:$true] %s968_s5  ;;  %s971_s27 = int_to_ptr.hbm [resolvable:$true] %s970_s27 }
  0x46   : > { %v441_v43 = vadd.f32 %v433_v30, %v411_v34  ;;  %v1722_v48 = vperm.slane %v468_v41, 1  ;;  %v1724_v49 = vperm.slane %v496_v42, 1  ;;  %v380_v51 = vmul.f32 %v376_v44, %v1642_v13  ;;  %s953_s6 = scalar_lea.sflag [#allocation4], %s1590_s2  ;;  %s1361_s7 = sshra.s32 %s971_s27, 4  ;;  %s1362_s7 = int_to_ptr.hbm [resolvable:$true] %s1361_s7 }
  0x47   : > { %v402_v52 = vmul.f32 %v398_v45, %v1701_v35  ;;  %v333_v53 = vrot.slane %v1693_v33, 7  ;;  %v348_v54 = vrot.slane %v1690_v32, 1  ;;  %v432_v55 = vmul.f32 %v428_v47, %v1715_v39  ;;  %s1363_s14 = scalar_lea.hbm %s1362_s7, 64  ;;  %s1367_s26 = scalar_lea.hbm %s2246_s4, 128 }
  0x48   : > { %625 = vrot.lane.b32.xlu2 %v441_v43, %s1449_s21  ;;  %v1735_v56 = vmul.f32 %v1722_v48, %v1701_v35  ;;  %v1739_v57 = vmul.f32 %v1724_v49, %v1715_v39  ;;  %v352_v58 = vrot.slane %v1693_v33, 1  ;;  %v367_v61 = vperm.slane %v1674_v23, 0  ;;  %p1364_p1 = scmp.ne.s32.totalorder %s1362_s7, %s1363_s14  ;;  %p1368_p10 = scmp.lt.s32.totalorder %s1362_s7, %s2246_s4 }
  0x49   : > { %v410_v59 = vadd.f32 %v402_v52, %v380_v51  ;;  %v1744_v60 = vsel %vm339_vm0, %v333_v53, %v329_v50  ;;  %v389_v62 = vperm.slane %v1672_v22, 0  ;;  %v419_v11 = vperm.slane %v1681_v27, 0  ;;  %p1369_p12 = scmp.lt.s32.totalorder %s1367_s26, %s1363_s14 }
  0x4a   : > { %v1750_v63 = vsel %vm356_vm1, %v348_v54, %v352_v58  ;;  %v467_v12 = vperm.slane %v1672_v22, 1  ;;  %v495_v15 = vperm.slane %v1681_v27, 1  ;;  %v375_v26 = vperm.slane %v367_v61, 0  ;;  %p1365_p4 = pnand %p1364_p1, %p1556_p7 }
  0x4b   : > { %v440_v25 = vadd.f32 %v432_v55, %v410_v59  ;;  %v397_v30 = vperm.slane %v389_v62, 0  ;;  %v1761_v34 = vsel %vm339_vm0, %v331_v7, %v335_v8  ;;  %v1763_v36 = vld [vmem:[#allocation1 + $0x3] ss:$4 sm:$0xff]  ;;  %v427_v37 = vperm.slane %v419_v11, 0  ;;  %p1370_p13 = por %p1369_p12, %p1368_p10 }
  0x4c   : > { %v1765_v40 = vperm.slane %v467_v12, 1  ;;  %v1767_v41 = vperm.slane %v495_v15, 1  ;;  %v1775_v42 = vsel %vm356_vm1, %v354_v10, %v350_v9  ;;  %768 = vst.sshfl [vmem:[#allocation1] sm:$0xff pattern:$0x75643120] %v1672_v22  ;;  %v379_v7 = vmul.f32 %v375_v26, %v1690_v32  ;;  %p1366_p8 = pneg %p1365_p4 }
  0x4d   : > { %621 = vrot.lane.b32.xlu1 %v440_v25, %s1449_s21  ;;  %v401_v8 = vmul.f32 %v397_v30, %v1744_v60  ;;  %v385_v43 = vmul.f32 %v1665_v18, %v1625_v3  ;;  %v407_v51 = vmul.f32 %v1667_v19, %v1761_v34  ;;  %v431_v52 = vmul.f32 %v427_v37, %v1750_v63 }
  0x4e   : > { %v1788_v9 = vmul.f32 %v1765_v40, %v1744_v60  ;;  %v1792_v10 = vmul.f32 %v1767_v41, %v1750_v63  ;;  %v437_v55 = vmul.f32 %v1670_v21, %v1775_v42  ;;  %769 = vst.sshfl [vmem:[#allocation1 + $0x8] sm:$0xff pattern:$0x75643120] %v1627_v4  ;;  %v1803_v19 = vsel %vm339_vm0, %v330_v24, %v334_v28  ;;  %v1814_v21 = vld [vmem:[%s1596_s8 + $0x18] sm:$0xff]  ;;  %p1371_p0 = pnand %p1370_p13, %p1366_p8 }
  0x4f   : > { %v409_v59 = vadd.f32 %v401_v8, %v379_v7  ;;  %v415_v18 = vadd.f32 %v407_v51, %v385_v43  ;;  %v1811_v61 = vsel %vm356_vm1, %v353_v31, %v349_v29  ;;  %v384_v62 = vmul.f32 %v376_v44, %v1655_v16 }
  0x50   : > { %v406_v11 = vmul.f32 %v398_v45, %v1803_v19  ;;  %v436_v12 = vmul.f32 %v428_v47, %v1811_v61  ;;  %v1821_v24 = vsel %vm339_vm0, %v329_v50, %v333_v53  ;;  %v1825_v25 = vsel %vm356_vm1, %v352_v58, %v348_v54 }
  0x51   : > { %v439_v28 = vadd.f32 %v431_v52, %v409_v59  ;;  %v445_v15 = vadd.f32 %v437_v55, %v415_v18  ;;  %v383_v29 = vmul.f32 %v375_v26, %v1693_v33  ;;  %v405_v7 = vmul.f32 %v397_v30, %v1821_v24 }
  0x52   : > { %v414_v31 = vadd.f32 %v406_v11, %v384_v62  ;;  %v435_v44 = vmul.f32 %v427_v37, %v1825_v25  ;;  %v332_v45 = vrot.slane %v1814_v21, 7  ;;  %v336_v47 = vrot.slane %v1707_v38, 7 }
  0x53   : > { %617 = vrot.lane.b32.xlu0 %v439_v28, %s1449_s21  ;;  %627 = vrot.lane.b32.xlu2 %v445_v15, %s1449_s21  ;;  %v351_v50 = vrot.slane %v1814_v21, 1  ;;  %v355_v53 = vrot.slane %v1707_v38, 1  ;;  %v370_v54 = vperm.slane %v1631_v5, 4  ;;  %v413_v26 = vadd.f32 %v405_v7, %v383_v29 }
  0x54   : > { %v444_v58 = vadd.f32 %v436_v12, %v414_v31  ;;  %v392_v30 = vperm.slane %v1627_v4, 4  ;;  %v422_v37 = vperm.slane %v1633_v6, 4  ;;  %v1841_v8 = vsel %vm339_vm0, %v332_v45, %v336_v47 }
  0x55   : > { %v1845_v43 = vsel %vm356_vm1, %v355_v53, %v351_v50  ;;  %v378_v51 = vperm.slane %v370_v54, 0  ;;  %v523_v52 = vperm.slane %v1674_v23, 2  ;;  %v1848_v55 = vld [vmem:[#allocation1 + $0x1] ss:$2 sm:$0xff]  ;;  %v443_v59 = vadd.f32 %v435_v44, %v413_v26 }
  0x56   : > { %623 = vrot.lane.b32.xlu1 %v444_v58, %s1449_s21  ;;  %v400_v18 = vperm.slane %v392_v30, 0  ;;  %v430_v62 = vperm.slane %v422_v37, 0  ;;  %v543_v11 = vperm.slane %v1672_v22, 2  ;;  %852 = vst.sshfl [vmem:[#allocation1] sm:$0xff pattern:$0x75643120] %v1681_v27  ;;  %v1857_v29 = vsel %vm339_vm0, %v336_v47, %v332_v45 }
  0x57   : > { %v386_v12 = vmul.f32 %v378_v51, %v1707_v38  ;;  %v531_v28 = vperm.slane %v523_v52, 2  ;;  %v571_v15 = vperm.slane %v1681_v27, 2  ;;  %853 = vst.sshfl [vmem:[#allocation1 + $0x8] sm:$0xff pattern:$0x75643120] %v1633_v6  ;;  %v1864_v54 = vsel %vm356_vm1, %v351_v50, %v355_v53 }
  0x58   : > { %v408_v31 = vmul.f32 %v400_v18, %v1841_v8  ;;  %v438_v7 = vmul.f32 %v430_v62, %v1845_v43  ;;  %v551_v44 = vperm.slane %v543_v11, 2  ;;  %v382_v30 = vmul.f32 %v378_v51, %v1814_v21 }
  0x59   : > { %v535_v58 = vmul.f32 %v531_v28, %v1690_v32  ;;  %v579_v26 = vperm.slane %v571_v15, 2  ;;  %v404_v37 = vmul.f32 %v400_v18, %v1857_v29  ;;  %v434_v52 = vmul.f32 %v430_v62, %v1864_v54 }
  0x5a   : > { %v416_v45 = vadd.f32 %v408_v31, %v386_v12  ;;  %v555_v47 = vmul.f32 %v551_v44, %v1744_v60  ;;  %v524_v0 = vperm.slane %v1674_v23, 6  ;;  %v544_v53 = vperm.slane %v1672_v22, 6 }
  0x5b   : > { %619 = vrot.lane.b32.xlu0 %v443_v59, %s1449_s21  ;;  %v583_v1 = vmul.f32 %v579_v26, %v1750_v63  ;;  %v412_v50 = vadd.f32 %v404_v37, %v382_v30  ;;  %v572_v11 = vperm.slane %v1681_v27, 6  ;;  %v713_v18 = vrot.slane %v1814_v21, 2  ;;  %v322_v37 = vld [vmem:[%s1604_s10] sm:$0xff] }
  0x5c   : > { %v446_v15 = vadd.f32 %v438_v7, %v416_v45  ;;  %v563_v51 = vadd.f32 %v555_v47, %v535_v58  ;;  %v1876_v20 = vperm.slane %v524_v0, 2  ;;  %v1879_v62 = vperm.slane %v544_v53, 2 }
  0x5d   : > { %v442_v60 = vadd.f32 %v434_v52, %v412_v50  ;;  %v1881_v12 = vperm.slane %v572_v11, 2  ;;  %vm714_vm2 = vcmask 1041408   ;;  %vm716_vm3 = vcmask 1045508  }
  0x5e   : > { %631 = vrot.lane.b32.xlu1 %v446_v15, %s1449_s21  ;;  %v591_v63 = vadd.f32 %v583_v1, %v563_v51  ;;  %v536_v59 = vmul.f32 %v1876_v20, %v1642_v13  ;;  %v715_v0 = vsel %vm714_vm2, %v1690_v32, %v711_v46  ;;  %v556_v31 = vmul.f32 %v1879_v62, %v1701_v35 }
  0x5f   : > { %v584_v7 = vmul.f32 %v1881_v12, %v1715_v39  ;;  %v2263_v58 = vrot.slane %v1622_v2, 4  ;;  %vm718_vm4 = vcmask 1043456   ;;  %v807_v46 = vrot.slane %v1681_v27, 2 }
  0x60   : > { %652 = vrot.lane.b32.xlu2 %v591_v63, %s1450_s23  ;;  %v808_v47 = vrot.slane %v1633_v6, 4  ;;  %v809_v35 = vrot.slane %v1633_v6, 6  ;;  %v564_v52 = vadd.f32 %v556_v31, %v536_v59  ;;  %v539_v39 = vmul.f32 %v531_v28, %v1693_v33 }
  0x61   : > { %v717_v30 = vsel %vm716_vm3, %v2263_v58, %v713_v18  ;;  %v559_v50 = vmul.f32 %v551_v44, %v1821_v24  ;;  %v810_v53 = vsel %vm714_vm2, %v1681_v27, %v807_v46  ;;  %v587_v15 = vmul.f32 %v579_v26, %v1825_v25 }
  0x62   : > { %v719_v45 = vsel %vm718_vm4, %v715_v0, %v717_v30  ;;  %v811_v11 = vsel %vm716_vm3, %v808_v47, %v809_v35  ;;  %v592_v51 = vadd.f32 %v584_v7, %v564_v52  ;;  %v855_v0 = vld [vmem:[#allocation1 + $0x1] ss:$2 sm:$0xff]  ;;  %v723_v7 = vrot.slane %v1672_v22, 2 }
  0x63   : > { %v720_v1 = vrot.slane %v719_v45, 7  ;;  %629 = vrot.lane.b32.xlu0 %v442_v60, %s1449_s21  ;;  %v1913_v63 = vsel %vm718_vm4, %v810_v53, %v811_v11  ;;  %v567_v59 = vadd.f32 %v559_v50, %v539_v39  ;;  %v856_v60 = vrot.slane %v855_v0, 7 }
  0x64   : > { %v815_v28 = vrot.slane %v1913_v63, 7  ;;  %v724_v58 = vrot.slane %v1627_v4, 4  ;;  %v725_v30 = vrot.slane %v1627_v4, 6  ;;  %v1121_v47 = vrot.slane %v1763_v36, 9 }
  0x65   : > { %v1910_v18 = vsub.f32 %v322_v37, %v720_v1  ;;  %v595_v27 = vadd.f32 %v587_v15, %v567_v59  ;;  %v726_v52 = vsel %vm714_vm2, %v1672_v22, %v723_v7  ;;  %v525_v22 = vperm.slane %v1631_v5, 2 }
  0x66   : > { %656 = vrot.lane.b32.xlu1 %v592_v51, %s1450_s23  ;;  %v727_v1 = vsel %vm716_vm3, %v724_v58, %v725_v30  ;;  %v1930_v50 = vsub.f32 %v322_v37, %v1121_v47  ;;  %v545_v51 = vperm.slane %v1627_v4, 2  ;;  %v573_v59 = vperm.slane %v1633_v6, 2 }
  0x67   : > { %v817_v44 = vmul.f32 %v815_v28, %v1910_v18  ;;  %v858_v46 = vmul.f32 %v856_v60, %v1910_v18  ;;  %v1934_v53 = vsel %vm718_vm4, %v726_v52, %v727_v1  ;;  %v533_v28 = vperm.slane %v525_v22, 2 }
  0x68   : > { %v734_v36 = vmul.f32 %v1934_v53, %v1930_v50  ;;  %v773_v47 = vmul.f32 %v1848_v55, %v1930_v50  ;;  %v546_v52 = vperm.slane %v1627_v4, 6  ;;  %v574_v55 = vperm.slane %v1633_v6, 6 }
  0x69   : > { %v819_v31 = vperm.slane %v817_v44, 1  ;;  %v821_v26 = vperm.slane %v817_v44, 5  ;;  %v822_v45 = vperm.slane %v817_v44, 7  ;;  %v820_v35 = vperm.slane %v817_v44, 3 }
  0x6a   : > { %v861_v39 = vperm.slane %v858_v46, 3  ;;  %v862_v11 = vperm.slane %v858_v46, 5  ;;  %v860_v15 = vperm.slane %v858_v46, 1  ;;  %v736_v37 = vperm.slane %v734_v36, 0 }
  0x6b   : > { %827 = vrot.lane.b32.xlu2 %v819_v31, %s1449_s21  ;;  %654 = vrot.lane.b32.xlu0 %v595_v27, %s1450_s23  ;;  %v553_v44 = vperm.slane %v545_v51, 2  ;;  %v581_v27 = vperm.slane %v573_v59, 2  ;;  %v537_v0 = vmul.f32 %v533_v28, %v1622_v2  ;;  %v863_v7 = vperm.slane %v858_v46, 7 }
  0x6c   : > { %v775_v1 = vperm.slane %v773_v47, 0  ;;  %v554_v46 = vperm.slane %v546_v52, 2  ;;  %v541_v22 = vmul.f32 %v533_v28, %v1625_v3  ;;  %v540_v28 = vmul.f32 %v1876_v20, %v1655_v16 }
  0x6d   : > { %v557_v31 = vmul.f32 %v553_v44, %v1650_v14  ;;  %v585_v60 = vmul.f32 %v581_v27, %v1663_v17  ;;  %v561_v51 = vmul.f32 %v553_v44, %v1761_v34  ;;  %v560_v44 = vmul.f32 %v1879_v62, %v1803_v19 }
  0x6e   : > { %831 = vrot.lane.b32.xlu1 %v821_v26, %s1449_s21  ;;  %v737_v26 = vperm.slane %v734_v36, 2  ;;  %v558_v52 = vmul.f32 %v554_v46, %v1857_v29  ;;  %v469_v20 = vperm.slane %v1627_v4, 1  ;;  %v497_v62 = vperm.slane %v1633_v6, 1 }
  0x6f   : > { %v565_v58 = vadd.f32 %v557_v31, %v537_v0  ;;  %v569_v0 = vadd.f32 %v561_v51, %v541_v22  ;;  %v589_v31 = vmul.f32 %v581_v27, %v1775_v42  ;;  %v568_v27 = vadd.f32 %v560_v44, %v540_v28 }
  0x70   : > { %vm913_vm8 = vcmask 1040384   ;;  %vm915_vm9 = vcmask 1042434  }
  0x71   : > { %v593_v30 = vadd.f32 %v585_v60, %v565_v58  ;;  %v776_v60 = vperm.slane %v773_v47, 2  ;;  %v597_v58 = vadd.f32 %v589_v31, %v569_v0 }
  0x73   : > { %833 = vrot.lane.b32.xlu2 %v822_v45, %s1449_s21  ;;  %829 = vrot.lane.b32.xlu0 %v820_v35, %s1449_s21  ;;  %v739_v45 = vperm.slane %v734_v36, 6  ;;  %v526_v35 = vperm.slane %v1631_v5, 6 }
  0x76   : > { %870 = vrot.lane.b32.xlu1 %v861_v39, %s1450_s23  ;;  %v738_v39 = vperm.slane %v734_v36, 4  ;;  %v778_v36 = vperm.slane %v773_v47, 6 }
  0x7b   : > { %872 = vrot.lane.b32.xlu2 %v862_v11, %s1450_s23  ;;  %868 = vrot.lane.b32.xlu0 %v860_v15, %s1450_s23  ;;  %v534_v11 = vperm.slane %v526_v35, 2  ;;  %v777_v15 = vperm.slane %v773_v47, 4  ;;  %v588_v47 = vmul.f32 %v1881_v12, %v1811_v61  ;;  %v449_v12 = vperm.slane %v1631_v5, 1 }
  0x7d   : > { %v542_v59 = vmul.f32 %v534_v11, %v1707_v38  ;;  %v538_v35 = vmul.f32 %v534_v11, %v1814_v21  ;;  %v596_v22 = vadd.f32 %v588_v47, %v568_v27  ;;  %v1979_v11 = vperm.slane %v469_v20, 1 }
  0x7e   : > { %744 = vrot.lane.b32.xlu1 %v736_v37, %s1449_s21  ;;  %v562_v37 = vmul.f32 %v554_v46, %v1841_v8  ;;  %v1981_v46 = vperm.slane %v497_v62, 1  ;;  %v2264_v47 = vlaneseq }
  0x80   : > { %v509_v0 = vmul.f32 %v1981_v46, %v1663_v17  ;;  %v484_v17 = vmul.f32 %v1722_v48, %v1803_v19  ;;  %vm2193_vm7 = vcmp.lt.s32.totalorder %v2264_v47, 512 }
  0x83   : > { %746 = vrot.lane.b32.xlu2 %v737_v26, %s1449_s21  ;;  %874 = vrot.lane.b32.xlu0 %v863_v7, %s1450_s23  ;;  %v582_v26 = vperm.slane %v574_v55, 2  ;;  %v570_v7 = vadd.f32 %v562_v37, %v542_v59  ;;  %v448_v55 = vperm.slane %v1674_v23, 5  ;;  %v481_v59 = vmul.f32 %v1979_v11, %v1650_v14 }
  0x84   : > { %v1989_v37 = vperm.slane %v449_v12, 1 }
  0x86   : > { %750 = vrot.lane.b32.xlu1 %v739_v45, %s1449_s21  ;;  %v590_v45 = vmul.f32 %v582_v26, %v1845_v43  ;;  %v461_v31 = vmul.f32 %v1989_v37, %v1622_v2 }
  0x8b   : > { %783 = vrot.lane.b32.xlu2 %v775_v1, %s1450_s23  ;;  %748 = vrot.lane.b32.xlu0 %v738_v39, %s1449_s21  ;;  %v598_v1 = vadd.f32 %v590_v45, %v570_v7  ;;  %v566_v39 = vadd.f32 %v558_v52, %v538_v35  ;;  %v512_v45 = vmul.f32 %v1724_v49, %v1811_v61 }
  0x8e   : > { %787 = vrot.lane.b32.xlu1 %v777_v15, %s1450_s23  ;;  %v586_v15 = vmul.f32 %v582_v26, %v1864_v54 }
  0x90   : > { %v594_v51 = vadd.f32 %v586_v15, %v566_v39 }
  0x93   : > { %789 = vrot.lane.b32.xlu2 %v778_v36, %s1450_s23  ;;  %785 = vrot.lane.b32.xlu0 %v776_v60, %s1450_s23  ;;  %v456_v36 = vperm.slane %v448_v55, 1  ;;  %v489_v60 = vadd.f32 %v481_v59, %v461_v31 }
  0x95   : > { %v460_v26 = vmul.f32 %v456_v36, %v1642_v13  ;;  %v517_v44 = vadd.f32 %v509_v0, %v489_v60  ;;  %v447_v13 = vperm.slane %v1674_v23, 1 }
  0x96   : > { %662 = vrot.lane.b32.xlu1 %v597_v58, %s1450_s23  ;;  %v464_v58 = vmul.f32 %v456_v36, %v1655_v16  ;;  %v511_v16 = vmul.f32 %v1767_v41, %v1825_v25 }
  0x97   : > { %v488_v28 = vadd.f32 %v1735_v56, %v460_v26  ;;  %v455_v52 = vperm.slane %v447_v13, 1 }
  0x98   : > { %v492_v2 = vadd.f32 %v484_v17, %v464_v58 }
  0x99   : > { %v516_v14 = vadd.f32 %v1739_v57, %v488_v28  ;;  %v463_v56 = vmul.f32 %v455_v52, %v1693_v33  ;;  %v483_v57 = vmul.f32 %v1765_v40, %v1821_v24  ;;  %v459_v48 = vmul.f32 %v455_v52, %v1690_v32 }
  0x9a   : > { %v520_v35 = vadd.f32 %v512_v45, %v492_v2  ;;  %v2019_v33 = vand.u32 127, %v2264_v47 }
  0x9b   : > { %666 = vrot.lane.b32.xlu2 %v598_v1, %s1450_s23  ;;  %658 = vrot.lane.b32.xlu0 %v596_v22, %s1450_s23  ;;  %v491_v19 = vadd.f32 %v483_v57, %v463_v56  ;;  %v487_v49 = vadd.f32 %v1788_v9, %v459_v48  ;;  %v450_v57 = vperm.slane %v1631_v5, 5 }
  0x9c   : > { %vm635_vm5 = vcmp.lt.s32.totalorder %v2019_v33, 32  ;;  %vm668_vm6 = vcmp.lt.s32.totalorder %v2019_v33, 96 }
  0x9d   : > { %v519_v61 = vadd.f32 %v511_v16, %v491_v19  ;;  %v515_v23 = vadd.f32 %v1792_v10, %v487_v49  ;;  %v470_v16 = vperm.slane %v1627_v4, 5  ;;  %v458_v19 = vperm.slane %v450_v57, 1 }
  0x9e   : > { %664 = vrot.lane.b32.xlu1 %v594_v51, %s1450_s23 }
  0x9f   : > { %v478_v49 = vperm.slane %v470_v16, 1 }
  0xa1   : > { %v486_v5 = vmul.f32 %v478_v49, %v1841_v8 }
  0xa2   : > { %v626_v7 = vpop.permute.xlu2 %625 }
  0xa3   : > { %660 = vrot.lane.b32.xlu0 %v593_v30, %s1450_s23  ;;  %v2016_v30 = vld [vmem:[#allocation8] sm:$0xf] }
  0xa4   : > { %v603_v20 = vperm.slane %v2016_v30, 2  ;;  %v602_v41 = vperm.slane %v2016_v30, 1  ;;  %v601_v12 = vperm.slane %v2016_v30, 0 }
  0xa6   : > { %v611_v32 = vadd.f32 %v603_v20, %v517_v44  ;;  %v610_v24 = vadd.f32 %v602_v41, %v516_v14  ;;  %v614_v55 = vadd.f32 %v602_v41, %v520_v35  ;;  %v613_v31 = vadd.f32 %v601_v12, %v519_v61 }
  0xa7   : > { %v609_v14 = vadd.f32 %v601_v12, %v515_v23  ;;  %v498_v61 = vperm.slane %v1633_v6, 5 }
  0xa9   : > { %v2080_v4 = vperm.slane %v498_v61, 1 }
  0xad   : > { %v2007_v27 = vpop.permute.xlu2 %627 }
  0xba   : > { %v2022_v62 = vpop.permute.xlu2 %652 }
  0xbf   : > { %v622_v40 = vpop.permute.xlu1 %621 }
  0xc0   : > { %v638_v9 = vsel %vm635_vm5, %v622_v40, %v626_v7 }
  0xc1   : > { %v2030_v10 = vadd.f32 %v638_v9, %v611_v32  ;;  %v466_v32 = vmul.f32 %v458_v19, %v1707_v38 }
  0xc3   : > { %v494_v9 = vadd.f32 %v486_v5, %v466_v32  ;;  %v814_v5 = vmul.f32 %v1913_v63, %v1910_v18 }
  0xc5   : > { %v828_v25 = vpop.permute.xlu2 %827  ;;  %v618_v1 = vpop.permute.xlu0 %617 }
  0xc6   : > { %v640_v39 = vsel %vm635_vm5, %v618_v1, %v622_v40 }
  0xc7   : > { %v2034_v15 = vadd.f32 %v640_v39, %v610_v24  ;;  %v514_v24 = vmul.f32 %v2080_v4, %v1845_v43 }
  0xc8   : > { %v624_v22 = vpop.permute.xlu1 %623 }
  0xc9   : > { %v2039_v51 = vsel %vm635_vm5, %v624_v22, %v2007_v27  ;;  %v522_v8 = vadd.f32 %v514_v24, %v494_v9 }
  0xcd   : > { %v834_v59 = vpop.permute.xlu2 %833  ;;  %v620_v36 = vpop.permute.xlu0 %619 }
  0xce   : > { %v641_v0 = vsel %vm635_vm5, %v620_v36, %v624_v22  ;;  %v604_v22 = vperm.slane %v2016_v30, 3  ;;  %v838_v43 = vsel %vm635_vm5, %v834_v59, %v828_v25 }
  0xcf   : > { %v2044_v26 = vadd.f32 %v641_v0, %v614_v55 }
  0xd0   : > { %v632_v60 = vpop.permute.xlu1 %631 }
  0xd1   : > { %v643_v28 = vsel %vm635_vm5, %v632_v60, %v620_v36 }
  0xd2   : > { %v2048_v44 = vadd.f32 %v643_v28, %v613_v31  ;;  %v616_v28 = vadd.f32 %v604_v22, %v522_v8 }
  0xd5   : > { %v873_v58 = vpop.permute.xlu2 %872  ;;  %v630_v17 = vpop.permute.xlu0 %629 }
  0xd6   : > { %v2053_v45 = vsel %vm635_vm5, %v626_v7, %v630_v17  ;;  %v642_v2 = vsel %vm635_vm5, %v630_v17, %v618_v1  ;;  %v637_v17 = vsel %vm635_vm5, %v2007_v27, %v632_v60 }
  0xd7   : > { %v644_v13 = vadd.f32 %v642_v2, %v609_v14  ;;  %v651_v57 = vadd.f32 %v637_v17, %v616_v28 }
  0xd8   : > { %v2057_v35 = vpop.permute.xlu1 %656 }
  0xd9   : > { %v673_v52 = vsel %vm668_vm6, %v2022_v62, %v2057_v35 }
  0xda   : > { %v2063_v56 = vadd.f32 %v673_v52, %v644_v13 }
  0xdc   : > { %685 = vst [vmem:[%s2069_s11] sm:$0xff] %v2063_v56 }
  0xdd   : > { %v2073_v7 = vpop.permute.xlu2 %746  ;;  %v2075_v48 = vpop.permute.xlu0 %654 }
  0xe0   : > { %v832_v23 = vpop.permute.xlu1 %831 }
  0xe1   : > { %v835_v39 = vsel %vm635_vm5, %v832_v23, %v834_v59 }
  0xe2   : > { %v845_v55 = vrot.slane %v835_v39, 2  ;;  %v465_v39 = vmul.f32 %v1989_v37, %v1625_v3  ;;  %v513_v3 = vmul.f32 %v1981_v46, %v1775_v42 }
  0xe5   : > { %v2082_v40 = vpop.permute.xlu2 %783  ;;  %v830_v41 = vpop.permute.xlu0 %829 }
  0xe6   : > { %v836_v6 = vsel %vm635_vm5, %v830_v41, %v832_v23  ;;  %v837_v38 = vsel %vm635_vm5, %v828_v25, %v830_v41 }
  0xe7   : > { %v843_v36 = vrot.slane %v837_v38, 6  ;;  %v844_v0 = vrot.slane %v836_v6, 4  ;;  %v485_v6 = vmul.f32 %v1979_v11, %v1761_v34 }
  0xe8   : > { %v871_v1 = vpop.permute.xlu1 %870 }
  0xe9   : > { %v846_v2 = vsel %vm714_vm2, %v838_v43, %v843_v36  ;;  %v847_v13 = vsel %vm716_vm3, %v844_v0, %v845_v55  ;;  %v877_v52 = vsel %vm668_vm6, %v871_v1, %v873_v58  ;;  %v493_v0 = vadd.f32 %v485_v6, %v465_v39 }
  0xea   : > { %v848_v16 = vsel %vm718_vm4, %v846_v2, %v847_v13  ;;  %v884_v59 = vrot.slane %v877_v52, 6  ;;  %v462_v2 = vmul.f32 %v458_v19, %v1814_v21  ;;  %v482_v13 = vmul.f32 %v478_v49, %v1857_v29 }
  0xeb   : > { %v849_v41 = vrot.slane %v848_v16, 7  ;;  %v521_v17 = vadd.f32 %v513_v3, %v493_v0  ;;  %v1122_v16 = vrot.slane %v1934_v53, 9 }
  0xed   : > { %v790_v12 = vpop.permute.xlu2 %789  ;;  %v869_v31 = vpop.permute.xlu0 %868  ;;  %v851_v63 = vadd.f32 %v849_v41, %v814_v5 }
  0xee   : > { %v878_v38 = vsel %vm668_vm6, %v869_v31, %v871_v1 }
  0xef   : > { %v887_v8 = vsel %vm714_vm2, %v878_v38, %v884_v59  ;;  %v794_v59 = vsel %vm668_vm6, %v790_v12, %v2082_v40 }
  0xf0   : > { %v745_v14 = vpop.permute.xlu1 %744  ;;  %v801_v53 = vrot.slane %v794_v59, 2 }
  0xf1   : > { %v754_v42 = vsel %vm635_vm5, %v745_v14, %v2073_v7 }
  0xf2   : > { %v760_v19 = vrot.slane %v754_v42, 6 }
  0xf5   : > { %v667_v25 = vpop.permute.xlu2 %666  ;;  %v875_v23 = vpop.permute.xlu0 %874 }
  0xf6   : > { %v676_v61 = vsel %vm668_vm6, %v667_v25, %v2075_v48  ;;  %v876_v27 = vsel %vm668_vm6, %v873_v58, %v875_v23  ;;  %v879_v60 = vsel %vm668_vm6, %v875_v23, %v869_v31  ;;  %v510_v23 = vmul.f32 %v2080_v4, %v1864_v54 }
  0xf7   : > { %v684_v32 = vadd.f32 %v676_v61, %v651_v57  ;;  %v885_v9 = vrot.slane %v876_v27, 4  ;;  %v886_v24 = vrot.slane %v879_v60, 2  ;;  %v490_v61 = vadd.f32 %v482_v13, %v462_v2 }
  0xf8   : > { %v751_v58 = vpop.permute.xlu1 %750 }
  0xf9   : > { %692 = vst [vmem:[%s2069_s11 + $0x38] sm:$0xff] %v684_v32  ;;  %v888_v55 = vsel %vm716_vm3, %v885_v9, %v886_v24  ;;  %v755_v21 = vsel %vm635_vm5, %v751_v58, %v745_v14  ;;  %v518_v9 = vadd.f32 %v510_v23, %v490_v61 }
  0xfa   : > { %v889_v18 = vsel %vm718_vm4, %v887_v8, %v888_v55 }
  0xfb   : > { %v890_v36 = vrot.slane %v889_v18, 7 }
  0xfd   : > { %v892_v37 = vadd.f32 %v890_v36, %v851_v63  ;;  %v749_v43 = vpop.permute.xlu0 %748 }
  0xfe   : > { %v752_v34 = vsel %vm635_vm5, %v749_v43, %v751_v58  ;;  %v753_v11 = vsel %vm635_vm5, %v2073_v7, %v749_v43  ;;  %v615_v7 = vadd.f32 %v603_v20, %v521_v17 }
  0xff   : > { %v929_v1 = vperm.slane %v892_v37, 7  ;;  %v761_v31 = vrot.slane %v753_v11, 4  ;;  %v762_v28 = vrot.slane %v752_v34, 2  ;;  %v928_v58 = vperm.slane %v892_v37, 5 }
 0x100   : > { %v788_v46 = vpop.permute.xlu1 %787  ;;  %v650_v20 = vadd.f32 %v2039_v51, %v615_v7  ;;  %v612_v51 = vadd.f32 %v604_v22, %v518_v9  ;;  %v926_v63 = vperm.slane %v892_v37, 1  ;;  %v927_v0 = vperm.slane %v892_v37, 3 }
 0x101   : > { %v937_v52 = vadd.f32 %v929_v1, %v684_v32  ;;  %v791_v57 = vsel %vm668_vm6, %v788_v46, %v790_v12  ;;  %v764_v29 = vsel %vm716_vm3, %v761_v31, %v762_v28  ;;  %v763_v32 = vsel %vm714_vm2, %v755_v21, %v760_v19 }
 0x102   : > { %v800_v49 = vrot.slane %v791_v57, 4  ;;  %v732_v12 = vmul.f32 %v1122_v16, %v1930_v50  ;;  %v765_v14 = vsel %vm718_vm4, %v763_v32, %v764_v29  ;;  %v647_v43 = vadd.f32 %v2053_v45, %v612_v51 }
 0x103   : > { %945 = vst [vmem:[#allocation1 + $0x1b] sm:$0xff] %v937_v52 }
 0x104   : > { %v803_v5 = vsel %vm716_vm3, %v800_v49, %v801_v53  ;;  %v767_v24 = vadd.f32 %v765_v14, %v732_v12 }
 0x105   : > { %v786_v27 = vpop.permute.xlu0 %785 }
 0x106   : > { %v792_v60 = vsel %vm668_vm6, %v786_v27, %v788_v46  ;;  %v793_v54 = vsel %vm668_vm6, %v2082_v40, %v786_v27 }
 0x107   : > { %v799_v41 = vrot.slane %v792_v60, 6 }
 0x108   : > { %v663_v4 = vpop.permute.xlu1 %662 }
 0x109   : > { %v802_v50 = vsel %vm714_vm2, %v793_v54, %v799_v41  ;;  %v670_v39 = vsel %vm668_vm6, %v663_v4, %v667_v25 }
 0x10a   : > { %v804_v6 = vsel %vm718_vm4, %v802_v50, %v803_v5  ;;  %v683_v38 = vadd.f32 %v670_v39, %v650_v20 }
 0x10b   : > { %v806_v8 = vadd.f32 %v804_v6, %v767_v24 }
 0x10c   : > { %691 = vst [vmem:[%s2069_s11 + $0x30] sm:$0xff] %v683_v38  ;;  %v936_v55 = vadd.f32 %v928_v58, %v683_v38 }
 0x10d   : > { %v894_v18 = vperm.slane %v806_v8, 0  ;;  %v659_v40 = vpop.permute.xlu0 %658  ;;  %v897_v37 = vperm.slane %v806_v8, 6  ;;  %v896_v28 = vperm.slane %v806_v8, 4 }
 0x10e   : > { %944 = vst [vmem:[#allocation1 + $0x12] sm:$0xff] %v936_v55  ;;  %v672_v36 = vsel %vm668_vm6, %v659_v40, %v663_v4  ;;  %v674_v25 = vsel %vm668_vm6, %v2075_v48, %v659_v40 }
 0x10f   : > { %v681_v30 = vadd.f32 %v674_v25, %v2048_v44  ;;  %v682_v22 = vadd.f32 %v672_v36, %v2044_v26  ;;  %v902_v3 = vadd.f32 %v894_v18, %v2063_v56 }
 0x110   : > { %v665_v34 = vpop.permute.xlu1 %664 }
 0x111   : > { %689 = vst [vmem:[%s2069_s11 + $0x20] sm:$0xff] %v681_v30  ;;  %v934_v11 = vadd.f32 %v926_v63, %v681_v30  ;;  %v935_v1 = vadd.f32 %v927_v0, %v682_v22  ;;  %v675_v31 = vsel %vm668_vm6, %v665_v34, %v2022_v62  ;;  %v895_v62 = vperm.slane %v806_v8, 2 }
 0x112   : > { %690 = vst [vmem:[%s2069_s11 + $0x28] sm:$0xff] %v682_v22  ;;  %v680_v48 = vadd.f32 %v675_v31, %v647_v43 }
 0x113   : > { %942 = vst [vmem:[#allocation1] sm:$0xff] %v934_v11 }
 0x114   : > { %943 = vst [vmem:[#allocation1 + $0x9] sm:$0xff] %v935_v1  ;;  %v905_v44 = vadd.f32 %v897_v37, %v680_v48 }
 0x115   : > { %688 = vst [vmem:[%s2069_s11 + $0x18] sm:$0xff] %v680_v48  ;;  %v661_v26 = vpop.permute.xlu0 %660 }
 0x116   : > { %v669_v45 = vsel %vm668_vm6, %v661_v26, %v665_v34  ;;  %v671_v56 = vsel %vm668_vm6, %v2057_v35, %v661_v26  ;;  %v912_v42 = vrot.slane %v905_v44, 5 }
 0x117   : > { %v678_v17 = vadd.f32 %v671_v56, %v2034_v15  ;;  %v679_v2 = vadd.f32 %v669_v45, %v2030_v10 }
 0x119   : > { %686 = vst [vmem:[%s2069_s11 + $0x8] sm:$0xff] %v678_v17  ;;  %v903_v33 = vadd.f32 %v895_v62, %v678_v17  ;;  %v904_v35 = vadd.f32 %v896_v28, %v679_v2 }
 0x11a   : > { %687 = vst [vmem:[%s2069_s11 + $0x10] sm:$0xff] %v679_v2 }
 0x11b   : > { %v947_v10 = vld [vmem:[#allocation1 + $0x7] ss:$9 sm:$0xff]  ;;  %v910_v15 = vrot.slane %v903_v33, 7  ;;  %v911_v46 = vrot.slane %v904_v35, 6 }
 0x11c   : > { %1123 = vst.msk [vmem:[%s2069_s11 + $0x27] ss:$8 sm:$0xf] %vm2193_vm7, %v947_v10 }
 0x11d   : > { %v914_v47 = vsel %vm913_vm8, %v902_v3, %v910_v15  ;;  %v916_v52 = vsel %vm915_vm9, %v911_v46, %v912_v42 }
 0x11e   : > { %v917_v57 = vsel %vm714_vm2, %v914_v47, %v916_v52 }
 0x11f   : > { %923 = vst.msk [vmem:[%s2069_s11] ss:$8 sm:$0xf] %vm2193_vm7, %v917_v57 }
 0x120   : > { %1374 = shalt.err (!%p1371_p0)
}
 0x121   : > { %s1451_s2 = smov 512  }
 0x122   : > { %1144 = dma.vmem_to_hbm [thread:$0]  (%p1556_p7), %s969_s5, 1024, %s971_s27, %s953_s6, %s1451_s2, %s1451_s2, %s1449_s21  }
 0x123 PF: > { %s985_s28 = sand.u32 1, %s1421_s15   ;;  %p1161_p3 = pnand %p1108_p11, %p1522_p6 }
 0x124   : > { %s986_s12 = scalar_lea.sflag [#allocation4], %s985_s28 }
 0x125   : > { %p1162_p5 = pneg %p1161_p3 }
 0x127   : > { %1416 = dma.done.wait (%p1162_p5), %s986_s12, 1024  }
 0x128   : > { %1418 = vsyncadd (%p1162_p5), %s986_s12, 4294966272  ;;  %s24_s20 = sadd.s32 1, %s1441_s20   ;;  %s2267_s22 = sld [smem:[#allocation16_spill]] }
 0x129   : > { %p21_p9 = scmp.ge.s32.totalorder %s24_s20, 4   ;;  %s2268_s15 = smov %s1425_s16 }
 0x12a   : > { %s2269_s16 = smov %s1429_s17  ;;  %s2270_s17 = smov %s1565_s30 }
 0x12b   : > { %s2271_s18 = smov %s1437_s19  ;;  %23 = sbr.rel (!%p21_p9) target bundleno = 13 (0xd), region = 107 }
 0x12e   : > { %s2272_s19 = smov %s2267_s22 }
 0x130   :  { %992 = vsyncpa [#allocation3], 1 }
 0x131   :  { %994 = vsyncpa [#allocation3 + $0x1], 1 }
 0x132   :  { %995 = vsyncpa [#allocation6], 1 }
 0x133   :  { %997 = vsyncpa [#allocation6 + $0x1], 1 }
 0x134   :  { %998 = vsyncpa [#allocation9], 1 }
 0x135   :  { %999 = vsyncpa [#allocation4], 1 }
 0x136   :  { %1001 = vsyncpa [#allocation4 + $0x1], 1 }

</bundles_post_ra>
